<compile_context>
chip_gen: v5e
topology: v5e:2x2
jax: 0.10.0
libtpu: 0.0.40
codegen_flags: <defaults>
</compile_context>

<pallas_src>
import functools

import jax
import jax.numpy as jnp
from jax import lax
from jax.experimental import pallas as pl
from jax.experimental.pallas import tpu as pltpu

_LANE = 128          # lane width / hidden-dim padding granularity
_SUBLANE = 8
_TB_CANDIDATES = (2048, 1024, 512, 256, 128)   # batch-tile candidates
_VMEM_BUDGET = 48 * 1024 * 1024                # keep headroom under v7x 64 MiB


def _round_up(x, m):
    return ((x + m - 1) // m) * m


def _cdiv(a, b):
    return -(-a // b)


def _elementwise_bf16_ok():
    """bf16 VALU/EUP exist on v6e/v7x; v5e and older need f32 elementwise."""
    try:
        kind = jax.devices()[0].device_kind.lower()
    except Exception:
        return False
    return ("v6" in kind) or ("v7" in kind)


def critic_adv_kernel(x_ref,
                      w1_ref, b1_ref,
                      w2_ref, b2_ref,
                      w3_ref, b3_ref,
                      w4r_ref, b4_ref,
                      o_ref, *, ew_bf16):
    # x: (tb, state_dim) f32 -> cast to bf16 only at the MXU inputs.
    x = x_ref[...].astype(jnp.bfloat16)

    # ---- Linear(state_dim, mid) + ReLU  (bf16 MXU, f32 accumulate/bias) ----
    h = jnp.dot(x, w1_ref[...], preferred_element_type=jnp.float32) + b1_ref[...]
    if ew_bf16:
        h = jnp.maximum(h.astype(jnp.bfloat16), 0.0)          # bf16 VALU
    else:
        h = jnp.maximum(h, 0.0).astype(jnp.bfloat16)           # f32 VALU (v5e)

    # ---- Linear(mid, mid) + ReLU ----
    h = jnp.dot(h, w2_ref[...], preferred_element_type=jnp.float32) + b2_ref[...]
    if ew_bf16:
        h = jnp.maximum(h.astype(jnp.bfloat16), 0.0)
    else:
        h = jnp.maximum(h, 0.0).astype(jnp.bfloat16)

    # ---- Linear(mid, mid) + Hardswish (the 1/6 is folded into w4r) ----
    h = jnp.dot(h, w3_ref[...], preferred_element_type=jnp.float32) + b3_ref[...]
    if ew_bf16:
        hb = h.astype(jnp.bfloat16)
        h = hb * jnp.clip(hb + 3.0, 0.0, 6.0)                  # bf16
    else:
        h = (h * jnp.clip(h + 3.0, 0.0, 6.0)).astype(jnp.bfloat16)

    # ---- Linear(mid, 1): (1, mid) . (tb, mid)^T -> lane-dense (1, tb) ----
    out = lax.dot_general(
        w4r_ref[...], h,
        dimension_numbers=(((1,), (1,)), ((), ())),
        preferred_element_type=jnp.float32) + b4_ref[...]
    o_ref[...] = out.astype(o_ref.dtype)


def prepare_params(params):
    """One-time: pad the hidden dim to a multiple of 128, fold Hardswish's 1/6
    into w4, transpose w4 to a (1, mid) row, and cast weights to bf16."""
    w1, b1 = params["w1"], params["b1"]
    w2, b2 = params["w2"], params["b2"]
    w3, b3 = params["w3"], params["b3"]
    w4, b4 = params["w4"], params["b4"]

    mid = w1.shape[1]
    mid_p = _round_up(mid, _LANE)
    pc = mid_p - mid  # column padding

    w1p = jnp.pad(w1, ((0, 0), (0, pc))).astype(jnp.bfloat16)
    b1p = jnp.pad(b1, ((0, 0), (0, pc))).astype(jnp.float32)
    w2p = jnp.pad(w2, ((0, pc), (0, pc))).astype(jnp.bfloat16)
    b2p = jnp.pad(b2, ((0, 0), (0, pc))).astype(jnp.float32)
    w3p = jnp.pad(w3, ((0, pc), (0, pc))).astype(jnp.bfloat16)
    b3p = jnp.pad(b3, ((0, 0), (0, pc))).astype(jnp.float32)
    # (mid, 1) -> scale by 1/6 (Hardswish fold) -> (1, mid) row -> pad cols.
    w4r = jnp.pad((w4 * (1.0 / 6.0)).T, ((0, 0), (0, pc))).astype(jnp.bfloat16)
    b4p = b4.astype(jnp.float32)  # (1, 1)

    return dict(w1=w1p, b1=b1p, w2=w2p, b2=b2p, w3=w3p, b3=b3p,
                w4r=w4r, b4=b4p)


def _weight_vmem_bytes(state_dim, mid_p):
    sdp = _round_up(state_dim, _LANE)
    # single-buffered bf16 weights + f32 biases
    return (2 * (sdp * mid_p + 2 * mid_p * mid_p + mid_p)
            + 4 * (3 * mid_p + 1))


def _vmem_bytes_estimate(tb, state_dim, mid_p):
    sdp = _round_up(state_dim, _LANE)
    weights = _weight_vmem_bytes(state_dim, mid_p)
    io = 2 * tb * sdp * 4 + 2 * tb * 4           # double-buffered x tile + out
    inter = tb * (4 * sdp + 20 * mid_p)           # f32 h's + bf16 copies (generous)
    return weights + io + inter


def _select_tiling(batch, state_dim, mid_p):
    """Pick (tb, num_tiles). tb is a multiple of 128 whenever num_tiles > 1
    (lane-dense output blocks require it)."""
    tb_max = _TB_CANDIDATES[-1]
    for cand in _TB_CANDIDATES:
        if _vmem_bytes_estimate(cand, state_dim, mid_p) <= _VMEM_BUDGET:
            tb_max = cand
            break
    if batch > tb_max:
        return tb_max, _cdiv(batch, tb_max)
    if batch >= 256:
        # Two tiles so v7x's second TensorCore has work (no effect v5e/v6e).
        return _round_up(_cdiv(batch, 2), _LANE), 2
    return _round_up(batch, _SUBLANE), 1


def critic_adv_forward(state, prepared):
    """state: (batch, state_dim) f32; prepared: output of prepare_params."""
    batch, state_dim = state.shape
    p = prepared
    mid_p = p["w1"].shape[1]

    tb, num_tiles = _select_tiling(batch, state_dim, mid_p)
    batch_p = num_tiles * tb
    if batch_p != batch:
        state = jnp.pad(state, ((0, batch_p - batch), (0, 0)))

    # Grid-invariant weights/biases: VMEM-resident, single-buffered.
    def resident(a):
        return pl.BlockSpec(a.shape, lambda i: (0, 0),
                            pipeline_mode=pl.Buffered(1))

    # Explicit VMEM budget for the chosen tiling (with a little headroom).
    vmem_limit = max(min(_vmem_bytes_estimate(tb, state_dim, mid_p) + (8 << 20),
                         64 << 20), 32 << 20)

    weight_bytes = _weight_vmem_bytes(state_dim, mid_p)
    flops = 2 * batch_p * (state_dim * mid_p + 2 * mid_p * mid_p + mid_p)
    bytes_accessed = batch_p * state_dim * 4 + batch_p * 4 + weight_bytes

    ew_bf16 = _elementwise_bf16_ok()
    kernel = functools.partial(critic_adv_kernel, ew_bf16=ew_bf16)

    out = pl.pallas_call(
        kernel,
        out_shape=jax.ShapeDtypeStruct((1, batch_p), jnp.float32),
        grid=(num_tiles,),
        in_specs=[pl.BlockSpec((tb, state_dim), lambda i: (i, 0)),
                  resident(p["w1"]), resident(p["b1"]),
                  resident(p["w2"]), resident(p["b2"]),
                  resident(p["w3"]), resident(p["b3"]),
                  resident(p["w4r"]), resident(p["b4"])],
        out_specs=pl.BlockSpec((1, tb), lambda i: (0, i)),
        compiler_params=pltpu.CompilerParams(
            dimension_semantics=("parallel",),
            vmem_limit_bytes=int(vmem_limit)),
        cost_estimate=pl.CostEstimate(flops=int(flops),
                                      transcendentals=0,
                                      bytes_accessed=int(bytes_accessed)),
    )(state, p["w1"], p["b1"], p["w2"], p["b2"], p["w3"], p["b3"],
      p["w4r"], p["b4"])

    # Lane-dense (1, batch_p) -> module's (batch, 1) layout.
    return out[0, :batch][:, None]


def init_params(key, state_dim, mid_dim):
    """Deterministic init mimicking nn.Linear default (uniform +/- 1/sqrt(fan_in))."""
    ks = jax.random.split(key, 8)

    def linear(kw, kb, fan_in, fan_out):
        bound = 1.0 / jnp.sqrt(fan_in)
        w = jax.random.uniform(kw, (fan_in, fan_out), jnp.float32, -bound, bound)
        b = jax.random.uniform(kb, (1, fan_out), jnp.float32, -bound, bound)
        return w, b

    w1, b1 = linear(ks[0], ks[1], state_dim, mid_dim)
    w2, b2 = linear(ks[2], ks[3], mid_dim, mid_dim)
    w3, b3 = linear(ks[4], ks[5], mid_dim, mid_dim)
    w4, b4 = linear(ks[6], ks[7], mid_dim, 1)
    return dict(w1=w1, b1=b1, w2=w2, b2=b2, w3=w3, b3=b3, w4=w4, b4=b4)


def critic_adv_ref(state, p):
    """Pure-JAX f32 reference (exact module semantics)."""
    h = jnp.maximum(state @ p["w1"] + p["b1"], 0.0)
    h = jnp.maximum(h @ p["w2"] + p["b2"], 0.0)
    h = h @ p["w3"] + p["b3"]
    h = h * jnp.clip(h + 3.0, 0.0, 6.0) / 6.0
    return h @ p["w4"] + p["b4"]


if __name__ == "__main__":
    state_dim, mid_dim = 16, 32

    key = jax.random.PRNGKey(0)
    k_params, k_state1, k_state2 = jax.random.split(key, 3)

    params = init_params(k_params, state_dim, mid_dim)
    prepared = prepare_params(params)

    # Small batch: single tile, grid=(1,).
    batch = 8
    state = jax.random.normal(k_state1, (batch, state_dim), jnp.float32)
    out = jax.block_until_ready(critic_adv_forward(state, prepared))
    ref = critic_adv_ref(state, params)
    assert out.shape == (batch, 1), out.shape
    # bf16 MXU inputs (+ bf16 elementwise on v6e/v7x), f32 accumulate =>
    # compare against the f32 reference with a bf16-sized tolerance.
    assert jnp.allclose(out, ref, atol=5e-2, rtol=5e-2), (out, ref)

    # Mid-size batch: exercises the 2-tile (megacore) + batch-padding path.
    batch2 = 300
    state2 = jax.random.normal(k_state2, (batch2, state_dim), jnp.float32)
    out2 = jax.block_until_ready(critic_adv_forward(state2, prepared))
    ref2 = critic_adv_ref(state2, params)
    assert out2.shape == (batch2, 1), out2.shape
    assert jnp.allclose(out2, ref2, atol=5e-2, rtol=5e-2), (out2, ref2)

    print("KERNEL_OK")
</pallas_src>

<mosaic_0001>
module attributes {stable_mosaic.version = 11 : i64} {
  func.func @critic_adv_kernel(%arg0: i32, %arg1: memref<8x16xf32, #tpu.memory_space<vmem>>, %arg2: memref<16x128xbf16, #tpu.memory_space<vmem>>, %arg3: memref<1x128xf32, #tpu.memory_space<vmem>>, %arg4: memref<128x128xbf16, #tpu.memory_space<vmem>>, %arg5: memref<1x128xf32, #tpu.memory_space<vmem>>, %arg6: memref<128x128xbf16, #tpu.memory_space<vmem>>, %arg7: memref<1x128xf32, #tpu.memory_space<vmem>>, %arg8: memref<1x128xbf16, #tpu.memory_space<vmem>>, %arg9: memref<1x1xf32, #tpu.memory_space<vmem>>, %arg10: memref<1x8xf32, #tpu.memory_space<vmem>>) attributes {dimension_semantics = [#tpu.dimension_semantics<parallel>], iteration_bounds = array<i64: 1>, scalar_prefetch = 0 : i64, scratch_operands = 0 : i64, tpu.core_type = #tpu.core_type<tc>, window_params = [{transform_indices = @transform_0, window_bounds = array<i64: 8, 16>}, {pipeline_mode = #tpu.pipeline_mode<synchronous>, transform_indices = @transform_1, window_bounds = array<i64: 16, 128>}, {pipeline_mode = #tpu.pipeline_mode<synchronous>, transform_indices = @transform_2, window_bounds = array<i64: 1, 128>}, {pipeline_mode = #tpu.pipeline_mode<synchronous>, transform_indices = @transform_3, window_bounds = array<i64: 128, 128>}, {pipeline_mode = #tpu.pipeline_mode<synchronous>, transform_indices = @transform_4, window_bounds = array<i64: 1, 128>}, {pipeline_mode = #tpu.pipeline_mode<synchronous>, transform_indices = @transform_5, window_bounds = array<i64: 128, 128>}, {pipeline_mode = #tpu.pipeline_mode<synchronous>, transform_indices = @transform_6, window_bounds = array<i64: 1, 128>}, {pipeline_mode = #tpu.pipeline_mode<synchronous>, transform_indices = @transform_7, window_bounds = array<i64: 1, 128>}, {pipeline_mode = #tpu.pipeline_mode<synchronous>, transform_indices = @transform_8, window_bounds = array<i64: 1, 1>}, {transform_indices = @transform_9, window_bounds = array<i64: 1, 8>}]} {
    %c0 = arith.constant 0 : index
    %c0_0 = arith.constant 0 : index
    %0 = vector.load %arg1[%c0, %c0_0] : memref<8x16xf32, #tpu.memory_space<vmem>>, vector<8x16xf32>
    %1 = arith.truncf %0 : vector<8x16xf32> to vector<8x16xbf16>
    %c0_1 = arith.constant 0 : index
    %c0_2 = arith.constant 0 : index
    %2 = vector.load %arg2[%c0_1, %c0_2] : memref<16x128xbf16, #tpu.memory_space<vmem>>, vector<16x128xbf16>
    %cst = arith.constant dense<0.000000e+00> : vector<8x128xf32>
    %3 = tpu.matmul %1, %2, %cst {dimension_numbers = #tpu.dot_dimension_numbers<[1], [0], [0], [1], [0, 0, 1, 1], [], []>} : vector<8x16xbf16>, vector<16x128xbf16>, vector<8x128xf32> -> vector<8x128xf32>
    %c0_3 = arith.constant 0 : index
    %c0_4 = arith.constant 0 : index
    %4 = vector.load %arg3[%c0_3, %c0_4] : memref<1x128xf32, #tpu.memory_space<vmem>>, vector<1x128xf32>
    %5 = vector.broadcast %4 : vector<1x128xf32> to vector<8x128xf32>
    %6 = arith.addf %3, %5 : vector<8x128xf32>
    %cst_5 = arith.constant 0.000000e+00 : f32
    %7 = vector.broadcast %cst_5 : f32 to vector<8x128xf32>
    %8 = arith.maximumf %6, %7 : vector<8x128xf32>
    %9 = arith.truncf %8 : vector<8x128xf32> to vector<8x128xbf16>
    %c0_6 = arith.constant 0 : index
    %c0_7 = arith.constant 0 : index
    %10 = vector.load %arg4[%c0_6, %c0_7] : memref<128x128xbf16, #tpu.memory_space<vmem>>, vector<128x128xbf16>
    %cst_8 = arith.constant dense<0.000000e+00> : vector<8x128xf32>
    %11 = tpu.matmul %9, %10, %cst_8 {dimension_numbers = #tpu.dot_dimension_numbers<[1], [0], [0], [1], [0, 0, 1, 1], [], []>} : vector<8x128xbf16>, vector<128x128xbf16>, vector<8x128xf32> -> vector<8x128xf32>
    %c0_9 = arith.constant 0 : index
    %c0_10 = arith.constant 0 : index
    %12 = vector.load %arg5[%c0_9, %c0_10] : memref<1x128xf32, #tpu.memory_space<vmem>>, vector<1x128xf32>
    %13 = vector.broadcast %12 : vector<1x128xf32> to vector<8x128xf32>
    %14 = arith.addf %11, %13 : vector<8x128xf32>
    %cst_11 = arith.constant 0.000000e+00 : f32
    %15 = vector.broadcast %cst_11 : f32 to vector<8x128xf32>
    %16 = arith.maximumf %14, %15 : vector<8x128xf32>
    %17 = arith.truncf %16 : vector<8x128xf32> to vector<8x128xbf16>
    %c0_12 = arith.constant 0 : index
    %c0_13 = arith.constant 0 : index
    %18 = vector.load %arg6[%c0_12, %c0_13] : memref<128x128xbf16, #tpu.memory_space<vmem>>, vector<128x128xbf16>
    %cst_14 = arith.constant dense<0.000000e+00> : vector<8x128xf32>
    %19 = tpu.matmul %17, %18, %cst_14 {dimension_numbers = #tpu.dot_dimension_numbers<[1], [0], [0], [1], [0, 0, 1, 1], [], []>} : vector<8x128xbf16>, vector<128x128xbf16>, vector<8x128xf32> -> vector<8x128xf32>
    %c0_15 = arith.constant 0 : index
    %c0_16 = arith.constant 0 : index
    %20 = vector.load %arg7[%c0_15, %c0_16] : memref<1x128xf32, #tpu.memory_space<vmem>>, vector<1x128xf32>
    %21 = vector.broadcast %20 : vector<1x128xf32> to vector<8x128xf32>
    %22 = arith.addf %19, %21 : vector<8x128xf32>
    %cst_17 = arith.constant 3.000000e+00 : f32
    %23 = vector.broadcast %cst_17 : f32 to vector<8x128xf32>
    %24 = arith.addf %22, %23 : vector<8x128xf32>
    %cst_18 = arith.constant 0.000000e+00 : f32
    %cst_19 = arith.constant 6.000000e+00 : f32
    %25 = vector.broadcast %cst_18 : f32 to vector<8x128xf32>
    %26 = arith.maximumf %25, %24 : vector<8x128xf32>
    %27 = vector.broadcast %cst_19 : f32 to vector<8x128xf32>
    %28 = arith.minimumf %27, %26 : vector<8x128xf32>
    %29 = arith.mulf %22, %28 : vector<8x128xf32>
    %30 = arith.truncf %29 : vector<8x128xf32> to vector<8x128xbf16>
    %c0_20 = arith.constant 0 : index
    %c0_21 = arith.constant 0 : index
    %31 = vector.load %arg8[%c0_20, %c0_21] : memref<1x128xbf16, #tpu.memory_space<vmem>>, vector<1x128xbf16>
    %cst_22 = arith.constant dense<0.000000e+00> : vector<1x8xf32>
    %32 = tpu.matmul %31, %30, %cst_22 {dimension_numbers = #tpu.dot_dimension_numbers<[1], [1], [0], [0], [0, 0, 1, 0], [], []>} : vector<1x128xbf16>, vector<8x128xbf16>, vector<1x8xf32> -> vector<1x8xf32>
    %c0_23 = arith.constant 0 : index
    %c0_24 = arith.constant 0 : index
    %33 = vector.load %arg9[%c0_23, %c0_24] : memref<1x1xf32, #tpu.memory_space<vmem>>, vector<1x1xf32>
    %34 = vector.broadcast %33 : vector<1x1xf32> to vector<1x8xf32>
    %35 = arith.addf %32, %34 : vector<1x8xf32>
    %c0_25 = arith.constant 0 : index
    %c0_26 = arith.constant 0 : index
    %36 = vector.load %arg10[%c0_25, %c0_26] : memref<1x8xf32, #tpu.memory_space<vmem>>, vector<1x8xf32>
    tpu.vector_store %arg10[%c0_25, %c0_26], %35 {strides = array<i32>} : memref<1x8xf32, #tpu.memory_space<vmem>>, vector<1x8xf32>,
    return
  }
  func.func @transform_0(%arg0: i32) -> (i32, i32) {
    %c0_i32 = arith.constant 0 : i32
    %c0_i32_0 = arith.constant 0 : i32
    return %arg0, %c0_i32 : i32, i32
  }
  func.func @transform_1(%arg0: i32) -> (i32, i32) {
    %c0_i32 = arith.constant 0 : i32
    %c0_i32_0 = arith.constant 0 : i32
    %c0_i32_1 = arith.constant 0 : i32
    return %c0_i32, %c0_i32_0 : i32, i32
  }
  func.func @transform_2(%arg0: i32) -> (i32, i32) {
    %c0_i32 = arith.constant 0 : i32
    %c0_i32_0 = arith.constant 0 : i32
    %c0_i32_1 = arith.constant 0 : i32
    return %c0_i32, %c0_i32_0 : i32, i32
  }
  func.func @transform_3(%arg0: i32) -> (i32, i32) {
    %c0_i32 = arith.constant 0 : i32
    %c0_i32_0 = arith.constant 0 : i32
    %c0_i32_1 = arith.constant 0 : i32
    return %c0_i32, %c0_i32_0 : i32, i32
  }
  func.func @transform_4(%arg0: i32) -> (i32, i32) {
    %c0_i32 = arith.constant 0 : i32
    %c0_i32_0 = arith.constant 0 : i32
    %c0_i32_1 = arith.constant 0 : i32
    return %c0_i32, %c0_i32_0 : i32, i32
  }
  func.func @transform_5(%arg0: i32) -> (i32, i32) {
    %c0_i32 = arith.constant 0 : i32
    %c0_i32_0 = arith.constant 0 : i32
    %c0_i32_1 = arith.constant 0 : i32
    return %c0_i32, %c0_i32_0 : i32, i32
  }
  func.func @transform_6(%arg0: i32) -> (i32, i32) {
    %c0_i32 = arith.constant 0 : i32
    %c0_i32_0 = arith.constant 0 : i32
    %c0_i32_1 = arith.constant 0 : i32
    return %c0_i32, %c0_i32_0 : i32, i32
  }
  func.func @transform_7(%arg0: i32) -> (i32, i32) {
    %c0_i32 = arith.constant 0 : i32
    %c0_i32_0 = arith.constant 0 : i32
    %c0_i32_1 = arith.constant 0 : i32
    return %c0_i32, %c0_i32_0 : i32, i32
  }
  func.func @transform_8(%arg0: i32) -> (i32, i32) {
    %c0_i32 = arith.constant 0 : i32
    %c0_i32_0 = arith.constant 0 : i32
    %c0_i32_1 = arith.constant 0 : i32
    return %c0_i32, %c0_i32_0 : i32, i32
  }
  func.func @transform_9(%arg0: i32) -> (i32, i32) {
    %c0_i32 = arith.constant 0 : i32
    %c0_i32_0 = arith.constant 0 : i32
    return %c0_i32, %arg0 : i32, i32
  }
}

</mosaic_0001>

<bundles_post_ra>
// kernel: tpu_custom_call.1
= control target key start
LH: loop header
LB: loop body
LE: loop exit
PB: predicated region body
PF: predicated region fallthrough
CT: control target
= control target key end

     0   :  { %s655_s0 = inlined_call_operand.hbm [shape: f32[8,16], index: 0, kind: input, shape index: {}]   ;;  %s656_s1 = inlined_call_operand.hbm [shape: bf16[16,128], index: 1, kind: input, shape index: {}]   ;;  %s657_s2 = inlined_call_operand.vmem [shape: f32[1,128], index: 2, kind: input, shape index: {}]   ;;  %s658_s3 = inlined_call_operand.hbm [shape: bf16[128,128], index: 3, kind: input, shape index: {}]   ;;  %s659_s4 = inlined_call_operand.vmem [shape: f32[1,128], index: 4, kind: input, shape index: {}]   ;;  %s660_s5 = inlined_call_operand.hbm [shape: bf16[128,128], index: 5, kind: input, shape index: {}]   ;;  %s661_s6 = inlined_call_operand.vmem [shape: f32[1,128], index: 6, kind: input, shape index: {}]   ;;  %s662_s7 = inlined_call_operand.vmem [shape: bf16[1,128], index: 7, kind: input, shape index: {}]   ;;  %s663_s8 = inlined_call_operand.<no memory space> [shape: f32[1,1], index: 8, kind: input, shape index: {}]   ;;  %s664_s9 = inlined_call_operand.hbm [shape: f32[1,8], index: 9, kind: output, shape index: {}]  }
   0x1   :  { %v14_v0 = vstv %s663_s8 }
   0x2   :  { %15 = vst [vmem:[#allocation2] sm:$0x1] %v14_v0 }
   0x3   :  { %16 = vsyncpa [#allocation4], 0 }
   0x4   :  { %17 = vsyncpa [#allocation7], 0 }
   0x5   :  { %18 = vsyncpa [#allocation10], 0  ;;  %s35_s13 = sshll.u32 %s656_s1, 4  ;;  %s36_s13 = int_to_ptr.hbm [resolvable:$true] %s35_s13 }
   0x6   :  { %19 = vsyncpa [#allocation5], 0  ;;  %s567_s14 = smov [#allocation6]   ;;  %s25_s18 = sshll.u32 %s655_s0, 4  ;;  %s26_s18 = int_to_ptr.hbm [resolvable:$true] %s25_s18 }
   0x7   :  { %s37_s15 = sshll.u32 %s567_s14, 4  ;;  %s568_s19 = smov 64   ;;  %s38_s15 = int_to_ptr.vmem [resolvable:$true] %s37_s15 }
   0x8   :  { %s569_s20 = smov 4   ;;  %s570_s8 = smov [#allocation3]  }
   0x9   :  { %43 = dma.hbm_to_vmem [thread:$0]  %s36_s13, 128, %s38_s15, [#allocation7], %s568_s19, %s568_s19, %s569_s20  }
   0xa   :  { %s27_s21 = sshll.u32 %s570_s8, 4  ;;  %s50_s24 = sshll.u32 %s658_s3, 4  ;;  %s28_s21 = int_to_ptr.vmem [resolvable:$true] %s27_s21  ;;  %s51_s24 = int_to_ptr.hbm [resolvable:$true] %s50_s24 }
   0xb   :  { %30 = dma.hbm_to_vmem [thread:$0]  %s26_s18, 128, %s28_s21, [#allocation4]  }
   0xc   :  { %s65_s26 = sshll.u32 %s660_s5, 4  ;;  %s571_s27 = smov [#allocation8]   ;;  %s66_s26 = int_to_ptr.hbm [resolvable:$true] %s65_s26 }
   0xd   :  { %s52_s28 = sshll.u32 %s571_s27, 4  ;;  %s572_s0 = smov [#allocation9]   ;;  %s53_s28 = int_to_ptr.vmem [resolvable:$true] %s52_s28 }
   0xe   :  { %58 = dma.hbm_to_vmem [thread:$0]  %s51_s24, 1024, %s53_s28, [#allocation7], %s568_s19, %s568_s19, %s569_s20  }
   0xf   :  { %s67_s29 = sshll.u32 %s572_s0, 4  ;;  %s68_s29 = int_to_ptr.vmem [resolvable:$true] %s67_s29 }
  0x10   :  { %73 = dma.hbm_to_vmem [thread:$0]  %s66_s26, 1024, %s68_s29, [#allocation10], %s568_s19, %s568_s19, %s569_s20  }
  0x11   :  { %559 = dma.done.wait [#allocation4], 128  }
  0x12   :  { %560 = vsyncadd [#allocation4], 4294967168 }
  0x13   :  { %561 = dma.done.wait [#allocation7], 1152  }
  0x14   :  { %562 = vsyncadd [#allocation7], 4294966144 }
  0x15   :  { %563 = dma.done.wait [#allocation10], 1024  }
  0x16   :  { %564 = vsyncadd [#allocation10], 4294966272  ;;  %v410_v1 = vld [vmem:[#allocation6] sm:$0xff]  ;;  %v97_v2 = vld [vmem:[#allocation3] sm:$0xff]  ;;  %vm111_vm0 = vcmask 130048   ;;  %v573_v33 = vmov 0  }
  0x17   :  { %v418_v3 = vld [vmem:[#allocation8 + $0x38] sm:$0xff]  ;;  %v98_v4 = vpack.c.bf16 %v97_v2, %v97_v2  ;;  %122 = vmatpush.bf16.msra.mxu0 %v410_v1  ;;  %v417_v5 = vld [vmem:[#allocation8 + $0x30] sm:$0xff]  ;;  %v416_v6 = vld [vmem:[#allocation8 + $0x28] sm:$0xff]  ;;  %435 = vset.pattern.permute.xlu0 %v573_v33  ;;  %s574_s13 = smov [#allocation11]   ;;  %s329_s16 = sshll.u32 %s664_s9, 4  ;;  %vm320_vm1 = vcmask 57344   ;;  %s330_s16 = int_to_ptr.hbm [resolvable:$true] %s329_s16 }
  0x18   :  { %198 = vmatpush.bf16.msra.mxu1 %v418_v3  ;;  %v415_v7 = vld [vmem:[#allocation8 + $0x20] sm:$0xff]  ;;  %v414_v8 = vld [vmem:[#allocation8 + $0x18] sm:$0xff]  ;;  %v413_v9 = vld [vmem:[#allocation8 + $0x10] sm:$0xff]  ;;  %s327_s14 = sshll.u32 %s574_s13, 4  ;;  %s328_s14 = int_to_ptr.vmem [resolvable:$true] %s327_s14 }
  0x19   :  { %v412_v10 = vld [vmem:[#allocation8 + $0x8] sm:$0xff]  ;;  %v411_v11 = vld [vmem:[#allocation8] sm:$0xff]  ;;  %v426_v12 = vld [vmem:[#allocation9 + $0x38] sm:$0xff] }
  0x1a   :  { %345 = vmatmul.msk.bf16.vlgmr.msra.gmra.mxu0 %vm111_vm0, %v98_v4  ;;  %281 = vmatpush.bf16.msra.mxu2 %v426_v12  ;;  %v425_v13 = vld [vmem:[#allocation9 + $0x30] sm:$0xff]  ;;  %v424_v14 = vld [vmem:[#allocation9 + $0x28] sm:$0xff]  ;;  %v423_v15 = vld [vmem:[#allocation9 + $0x20] sm:$0xff] }
  0x1b   :  { %v422_v16 = vld [vmem:[#allocation9 + $0x18] sm:$0xff]  ;;  %v421_v17 = vld [vmem:[#allocation9 + $0x10] sm:$0xff]  ;;  %v436_v18 = vld [vmem:[%s657_s2] ss:$0 sm:$0xff] }
  0x1c   :  { %199 = vmatpush.bf16.msra.mxu1 %v417_v5  ;;  %v420_v24 = vld [vmem:[#allocation9 + $0x8] sm:$0xff]  ;;  %v419_v25 = vld [vmem:[#allocation9] sm:$0xff] }
  0x1d   :  { %v437_v26 = vld [vmem:[%s659_s4] ss:$0 sm:$0xff] }
  0x1e   :  { %282 = vmatpush.bf16.msra.mxu2 %v425_v13  ;;  %v300_v32 = vld [vmem:[#allocation2] sm:$0x1] }
  0x1f   :  { %303 = vperm.xlu0 %435, %v300_v32   ;;  %v438_v34 = vld [vmem:[%s661_s6] ss:$0 sm:$0xff] }
  0x20   :  { %200 = vmatpush.bf16.msra.mxu1 %v416_v6  ;;  %v299_v43 = vld [vmem:[%s662_s7] sm:$0x1] }
  0x22   :  { %283 = vmatpush.bf16.msra.mxu2 %v424_v14 }
  0x24   :  { %201 = vmatpush.bf16.msra.mxu1 %v415_v7 }
  0x26   :  { %284 = vmatpush.bf16.msra.mxu2 %v423_v15 }
  0x28   :  { %202 = vmatpush.bf16.msra.mxu1 %v414_v8 }
  0x2a   :  { %285 = vmatpush.bf16.msra.mxu2 %v422_v16 }
  0x2c   :  { %203 = vmatpush.bf16.msra.mxu1 %v413_v9 }
  0x2e   :  { %286 = vmatpush.bf16.msra.mxu2 %v421_v17 }
  0x30   :  { %204 = vmatpush.bf16.msra.mxu1 %v412_v10 }
  0x32   :  { %287 = vmatpush.bf16.msra.mxu2 %v420_v24 }
  0x34   :  { %205 = vmatpush.bf16.msra.mxu1 %v411_v11 }
  0x36   :  { %288 = vmatpush.bf16.msra.mxu2 %v419_v25 }
  0x91   :  { %v304_v44 = vpop.permute.xlu0 %303 }
  0x92   :  { %v306_v45 = vperm.slane %v304_v44, 0 }
  0x97   :  { %v124_v19 = vpop.f32.mrf.mxu0 }
  0x98   :  { %v125_v20 = vadd.f32 %v436_v18, %v124_v19 }
  0x9a   :  { %v128_v21 = vmax.f32 %v125_v20, 0.0 }
  0x9c   :  { %v129_v22 = vpack.c.bf16 %v128_v21, %v128_v21 }
  0x9e   :  { %206 = vmatmul.bf16.vlgmr.msra.gmra.mxu1 %v129_v22 }
  0x9f   :  { %v126_v23 = vpop.f32.mrf.mxu0 }
 0x11b   :  { %v207_v27 = vpop.f32.mrf.mxu1 }
 0x11c   :  { %v208_v28 = vadd.f32 %v437_v26, %v207_v27 }
 0x11e   :  { %v211_v29 = vmax.f32 %v208_v28, 0.0 }
 0x120   :  { %v212_v30 = vpack.c.bf16 %v211_v29, %v211_v29 }
 0x122   :  { %289 = vmatmul.bf16.vlgmr.msra.gmra.mxu2 %v212_v30 }
 0x123   :  { %v209_v31 = vpop.f32.mrf.mxu1 }
 0x1a5   :  { %v290_v35 = vpop.f32.mrf.mxu2 }
 0x1a6   :  { %v291_v36 = vadd.f32 %v438_v34, %v290_v35 }
 0x1a8   :  { %v294_v37 = vadd.f32 3.0, %v291_v36 }
 0x1aa   :  { %v295_v38 = vmax.f32 %v294_v37, 0.0 }
 0x1ac   :  { %v296_v39 = vmin.f32 %v295_v38, 6.0 }
 0x1ad   :  { %v292_v40 = vpop.f32.mrf.mxu2 }
 0x1ae   :  { %v297_v41 = vmul.f32 %v296_v39, %v291_v36 }
 0x1b0   :  { %v298_v42 = vpack.c.bf16 %v297_v41, %v297_v41 }
 0x1b2   :  { %314 = vmatpush.bf16.xpose.msra.mxu3 %v298_v42 }
 0x1b9   :  { %315 = vmatmul.bf16.vlgmr.msra.gmra.mxu3 %v299_v43 }
 0x23c   :  { %v316_v46 = vpop.f32.mrf.mxu3 }
 0x23d   :  { %v317_v47 = vadd.f32 %v316_v46, %v306_v45 }
 0x23f   :  { %321 = vst.msk [vmem:[#allocation11] sm:$0x1] %vm320_vm1, %v317_v47 }
 0x240   :  { %332 = dma.vmem_to_hbm [thread:$0]  %s328_s14, 16, %s330_s16, [#allocation5]  }
 0x244   :  { %v318_v48 = vpop.f32.mrf.mxu3 }
 0x245   :  { %565 = dma.done.wait [#allocation5], 16  }
 0x246   :  { %566 = vsyncadd [#allocation5], 4294967280 }
 0x247   :  { %337 = vsyncpa [#allocation4], 1 }
 0x248   :  { %338 = vsyncpa [#allocation7], 1 }
 0x249   :  { %339 = vsyncpa [#allocation10], 1 }
 0x24a   :  { %340 = vsyncpa [#allocation5], 1 }

</bundles_post_ra>
